<compile_context>
chip_gen: v7x
topology: tpu7x:2x2x1
jax: 0.10.0
libtpu: 0.0.40
codegen_flags: <defaults>
</compile_context>

<pallas_src>
import functools

import jax
import jax.numpy as jnp
from jax import lax
from jax.experimental import pallas as pl
from jax.experimental.pallas import tpu as pltpu

LANES = 128      # vreg lane width
SUBLANES = 8     # vreg sublane count


def _dice_sums_kernel(tgt_ref, score_ref, out_ref, *,
                      n_classes, softmax, mask_invalid,
                      need_row_mask, n_valid_rows,
                      block_rows, chunk_rows):
    """Grid: (B, row tiles).

    Blocks:
      tgt_ref   : (1, block_rows, 128)      int32 class labels (-1 marks padding)
      score_ref : (1, C, block_rows, 128)   scores in their native dtype
      out_ref   : (1, 3*C, 8, 128)          f32 per-batch partial sums; the same
                                            block for every row tile (resident):
                                              planes [0,   C) -> intersect = sum(s * t)
                                              planes [C,  2C) -> z_sum     = sum(s * s)
                                              planes [2C, 3C) -> y_sum     = sum(t * t)
    """
    j = pl.program_id(1)

    @pl.when(j == 0)
    def _():
        out_ref[...] = jnp.zeros_like(out_ref)

    n_chunks = block_rows // chunk_rows

    def fold8(x):
        # (chunk_rows, 128) -> (8, 128) using only vreg-wise VPU adds (no XLU).
        if chunk_rows == SUBLANES:
            return x
        return x.reshape(chunk_rows // SUBLANES, SUBLANES, LANES).sum(axis=0)

    def chunk_body(ci, acc):
        r0 = pl.multiple_of(ci * chunk_rows, chunk_rows)
        tgt = tgt_ref[0, pl.ds(r0, chunk_rows), :]                       # (cr,128) i32
        s = [score_ref[0, c, pl.ds(r0, chunk_rows), :].astype(jnp.float32)
             for c in range(n_classes)]

        if need_row_mask:
            # Ragged last tile: rows past the real extent hold whatever was in
            # VMEM -- zero them before any use (including exp) to stay finite.
            row = (j * block_rows + r0
                   + lax.broadcasted_iota(jnp.int32, (chunk_rows, LANES), 0))
            rmask = row < n_valid_rows
            tgt = jnp.where(rmask, tgt, -1)
            s = [jnp.where(rmask, sc, 0.0) for sc in s]

        if softmax:
            m = s[0]
            for c in range(1, n_classes):
                m = jnp.maximum(m, s[c])
            den = None
            for c in range(n_classes):
                s[c] = jnp.exp(s[c] - m)            # overwrite in place, no 2nd list
                den = s[c] if den is None else den + s[c]
            # EUP reciprocal seed + one Newton step: ~f32-exact, cheaper than a
            # lowered divide; drop the Newton step if a few ULPs are acceptable.
            inv = pl.reciprocal(den, approx=True)
            inv = inv * (2.0 - den * inv)
            s = [sc * inv for sc in s]
            if mask_invalid:
                # Padded lanes/rows (tgt == -1) must not contribute to z_sum.
                vm = (tgt >= 0).astype(jnp.float32)
                s = [sc * vm for sc in s]

        acc = list(acc)
        for c in range(n_classes):
            t_c = (tgt == c).astype(jnp.float32)
            s_c = s[c]
            acc[c] = acc[c] + fold8(s_c * t_c)
            acc[n_classes + c] = acc[n_classes + c] + fold8(s_c * s_c)
            acc[2 * n_classes + c] = acc[2 * n_classes + c] + fold8(t_c)
        return tuple(acc)

    init = tuple(jnp.zeros((SUBLANES, LANES), jnp.float32)
                 for _ in range(3 * n_classes))
    acc = lax.fori_loop(0, n_chunks, chunk_body, init)

    # Full-vreg (8,128) accumulator updates, once per grid step.
    for idx in range(3 * n_classes):
        out_ref[0, idx] = out_ref[0, idx] + acc[idx]


def _per_step_byte_budget():
    """Per-grid-step streamed-byte budget (scores + targets), generation aware."""
    kind = ""
    try:
        kind = jax.devices()[0].device_kind.lower()
    except Exception:
        pass
    if "v7" in kind:
        return 12 << 20   # ~3.2 TB/s: large tiles amortize the ~0.35us step overhead
    if "v6" in kind:
        return 6 << 20    # ~1.4 TB/s
    return 3 << 20        # v5e (~0.82 TB/s) / unknown


def _dice_class_sums(scores, tgt, *, softmax, mask_invalid, need_row_mask,
                     n_valid_rows, block_rows, chunk_rows, vmem_limit_bytes):
    """scores: (B, C, n_rows, 128); tgt: (B, n_rows, 128) int32.
    Returns (B, 3*C, 8, 128) f32 per-batch sublane/lane-partial sums."""
    B, C, n_rows, _ = scores.shape
    grid = (B, pl.cdiv(n_rows, block_rows))
    kernel = functools.partial(
        _dice_sums_kernel, n_classes=C, softmax=softmax,
        mask_invalid=mask_invalid, need_row_mask=need_row_mask,
        n_valid_rows=n_valid_rows, block_rows=block_rows, chunk_rows=chunk_rows)
    return pl.pallas_call(
        kernel,
        out_shape=jax.ShapeDtypeStruct((B, 3 * C, SUBLANES, LANES), jnp.float32),
        grid_spec=pltpu.PrefetchScalarGridSpec(
            num_scalar_prefetch=0,
            grid=grid,
            in_specs=[
                pl.BlockSpec((1, block_rows, LANES), lambda b, j: (b, j, 0)),
                pl.BlockSpec((1, C, block_rows, LANES), lambda b, j: (b, 0, j, 0)),
            ],
            out_specs=pl.BlockSpec((1, 3 * C, SUBLANES, LANES),
                                   lambda b, j: (b, 0, 0, 0)),
        ),
        compiler_params=pltpu.CompilerParams(
            # Per-batch accumulators -> B axis can shard across TCs (v7x);
            # the row-tile axis is the reduction axis.
            dimension_semantics=("parallel", "arbitrary"),
            vmem_limit_bytes=vmem_limit_bytes,
        ),
    )(tgt, scores)


def dice_loss(inputs, target, n_classes, weight=None, softmax=False,
              block_rows=None):
    """JAX/Pallas equivalent of DiceLoss.forward(inputs, target, weight, softmax).

    inputs: (B, C, H, W) float logits/probabilities; target: (B, H, W) int labels.
    """
    B, C, H, W = inputs.shape
    assert C == n_classes, f"predict channels {C} != n_classes {n_classes}"
    assert target.shape == (B, H, W)
    HW = H * W
    itemsize = jnp.dtype(inputs.dtype).itemsize

    n_rows = pl.cdiv(HW, LANES)
    n_rows_pad = max(SUBLANES, ((n_rows + SUBLANES - 1) // SUBLANES) * SUBLANES)
    pad = n_rows_pad * LANES - HW            # 0 whenever H*W is a multiple of 1024

    # ---- tile sizing: generation-aware, multiple-of-8 rows ------------------
    row_bytes = LANES * (C * itemsize + 4)   # scores + int32 target per 128-lane row
    if block_rows is None:
        budget = _per_step_byte_budget()
        block_rows = max(SUBLANES, (budget // row_bytes) // SUBLANES * SUBLANES)
    else:
        block_rows = max(SUBLANES, (block_rows // SUBLANES) * SUBLANES)

    if n_rows_pad <= block_rows:
        block_rows = n_rows_pad              # one row tile per batch (full dim)
    else:
        # Prefer a divisor of n_rows_pad within ~half the budget so there is no
        # ragged last tile; otherwise keep the ragged tile and mask in-kernel.
        d = block_rows
        while d >= max(SUBLANES, block_rows // 2):
            if n_rows_pad % d == 0:
                block_rows = d
                break
            d -= SUBLANES
    need_row_mask = (n_rows_pad % block_rows) != 0
    chunk_rows = 16 if block_rows % 16 == 0 else SUBLANES

    # Double-buffered inputs + resident accumulators + headroom for the (small,
    # chunk-bounded) in-kernel f32 temporaries and Mosaic internal scratch.
    vmem_need = (2 * block_rows * row_bytes
                 + 2 * 3 * C * SUBLANES * LANES * 4
                 + (4 << 20))
    vmem_limit = int(min(max(vmem_need, 24 << 20), 48 << 20))

    # ---- layout: free reshapes; pad copy only when H*W is not 1024-aligned ---
    scores = inputs.reshape(B, C, HW)
    tgt = target.reshape(B, HW).astype(jnp.int32)
    if pad:
        # TODO(synk): for non-128-aligned H*W this still materializes one padded
        # copy in HBM; a fully pad-free path needs element-granular tail masking.
        scores = jnp.pad(scores, ((0, 0), (0, 0), (0, pad)))
        tgt = jnp.pad(tgt, ((0, 0), (0, pad)), constant_values=-1)
    scores = scores.reshape(B, C, n_rows_pad, LANES)
    tgt = tgt.reshape(B, n_rows_pad, LANES)

    out = _dice_class_sums(
        scores, tgt, softmax=softmax,
        # Padded zero-score columns only matter under softmax (they'd become 1/C);
        # without softmax they contribute exactly 0 and need no mask.
        mask_invalid=bool(softmax and (pad > 0 or need_row_mask)),
        need_row_mask=need_row_mask, n_valid_rows=n_rows_pad,
        block_rows=block_rows, chunk_rows=chunk_rows,
        vmem_limit_bytes=vmem_limit)

    sums = out.sum(axis=(0, 2, 3))           # tiny (3*C,) batch+sublane+lane reduce
    intersect = sums[:n_classes]
    z_sum = sums[n_classes:2 * n_classes]
    y_sum = sums[2 * n_classes:]

    smooth = 1e-5
    dice = 1.0 - (2.0 * intersect + smooth) / (z_sum + y_sum + smooth)
    w = (jnp.ones((n_classes,), jnp.float32) if weight is None
         else jnp.asarray(weight, jnp.float32))
    return jnp.sum(dice * w) / n_classes


def _dice_loss_ref(inputs, target, n_classes, weight=None, softmax=False):
    """Pure-JAX reference mirroring the PyTorch module, for verification."""
    if softmax:
        inputs = jax.nn.softmax(inputs, axis=1)
    smooth = 1e-5
    one_hot = (target[:, None, :, :] == jnp.arange(n_classes)[None, :, None, None]
               ).astype(jnp.float32)
    if weight is None:
        weight = [1.0] * n_classes
    loss = 0.0
    for i in range(n_classes):
        s = inputs[:, i].astype(jnp.float32)
        t = one_hot[:, i]
        intersect = jnp.sum(s * t)
        y_sum = jnp.sum(t * t)
        z_sum = jnp.sum(s * s)
        loss = loss + (1.0 - (2 * intersect + smooth) / (z_sum + y_sum + smooth)) * weight[i]
    return loss / n_classes


if __name__ == "__main__":
    n_classes = 4
    B, H, W = 2, 16, 16

    key = jax.random.PRNGKey(0)
    k_in, k_tgt = jax.random.split(key)
    inputs = jax.random.normal(k_in, (B, n_classes, H, W), dtype=jnp.float32)
    target = jax.random.randint(k_tgt, (B, H, W), 0, n_classes, dtype=jnp.int32)

    # Default path (softmax=False, weight=None), same as the PyTorch forward defaults.
    loss = jax.block_until_ready(dice_loss(inputs, target, n_classes))
    ref = jax.block_until_ready(_dice_loss_ref(inputs, target, n_classes))
    assert jnp.allclose(loss, ref, rtol=1e-5, atol=1e-6), (loss, ref)

    # softmax=True branch (fused in-kernel softmax; EUP reciprocal + Newton step).
    loss_sm = jax.block_until_ready(dice_loss(inputs, target, n_classes, softmax=True))
    ref_sm = jax.block_until_ready(_dice_loss_ref(inputs, target, n_classes, softmax=True))
    assert jnp.allclose(loss_sm, ref_sm, rtol=1e-4, atol=1e-5), (loss_sm, ref_sm)

    # Weighted branch.
    wts = [0.5, 1.0, 2.0, 1.5]
    loss_w = jax.block_until_ready(dice_loss(inputs, target, n_classes, weight=wts))
    ref_w = jax.block_until_ready(_dice_loss_ref(inputs, target, n_classes, weight=wts))
    assert jnp.allclose(loss_w, ref_w, rtol=1e-5, atol=1e-6), (loss_w, ref_w)

    print("KERNEL_OK")
</pallas_src>

<mosaic_0001>
module attributes {stable_mosaic.version = 11 : i64} {
  func.func @_dice_sums_kernel(%arg0: i32, %arg1: i32, %arg2: memref<1x8x128xi32, #tpu.memory_space<vmem>>, %arg3: memref<1x4x8x128xf32, #tpu.memory_space<vmem>>, %arg4: memref<1x12x8x128xf32, #tpu.memory_space<vmem>>) attributes {dimension_semantics = [#tpu.dimension_semantics<parallel>, #tpu.dimension_semantics<arbitrary>], iteration_bounds = array<i64: 2, 1>, scalar_prefetch = 0 : i64, scratch_operands = 0 : i64, tpu.core_type = #tpu.core_type<tc>, window_params = [{transform_indices = @transform_0, window_bounds = array<i64: 1, 8, 128>}, {transform_indices = @transform_1, window_bounds = array<i64: 1, 4, 8, 128>}, {transform_indices = @transform_2, window_bounds = array<i64: 1, 12, 8, 128>}]} {
    %c0_i32 = arith.constant 0 : i32
    %0 = arith.cmpi eq, %arg1, %c0_i32 : i32
    %1 = arith.extui %0 : i1 to i32
    %c0_i32_0 = arith.constant 0 : i32
    %2 = arith.cmpi ne, %1, %c0_i32_0 : i32
    scf.if %2 {
      %cst_113 = arith.constant 0.000000e+00 : f32
      %140 = vector.broadcast %cst_113 : f32 to vector<1x12x8x128xf32>
      %c0_114 = arith.constant 0 : index
      %c0_115 = arith.constant 0 : index
      %c0_116 = arith.constant 0 : index
      %c0_117 = arith.constant 0 : index
      %141 = vector.load %arg4[%c0_114, %c0_115, %c0_116, %c0_117] : memref<1x12x8x128xf32, #tpu.memory_space<vmem>>, vector<1x12x8x128xf32>
      tpu.vector_store %arg4[%c0_114, %c0_115, %c0_116, %c0_117], %140 {strides = array<i32>} : memref<1x12x8x128xf32, #tpu.memory_space<vmem>>, vector<1x12x8x128xf32>,
    } else {
    }
    %cst = arith.constant 0.000000e+00 : f32
    %3 = vector.broadcast %cst : f32 to vector<8x128xf32>
    %cst_1 = arith.constant 0.000000e+00 : f32
    %4 = vector.broadcast %cst_1 : f32 to vector<8x128xf32>
    %cst_2 = arith.constant 0.000000e+00 : f32
    %5 = vector.broadcast %cst_2 : f32 to vector<8x128xf32>
    %cst_3 = arith.constant 0.000000e+00 : f32
    %6 = vector.broadcast %cst_3 : f32 to vector<8x128xf32>
    %cst_4 = arith.constant 0.000000e+00 : f32
    %7 = vector.broadcast %cst_4 : f32 to vector<8x128xf32>
    %cst_5 = arith.constant 0.000000e+00 : f32
    %8 = vector.broadcast %cst_5 : f32 to vector<8x128xf32>
    %cst_6 = arith.constant 0.000000e+00 : f32
    %9 = vector.broadcast %cst_6 : f32 to vector<8x128xf32>
    %cst_7 = arith.constant 0.000000e+00 : f32
    %10 = vector.broadcast %cst_7 : f32 to vector<8x128xf32>
    %cst_8 = arith.constant 0.000000e+00 : f32
    %11 = vector.broadcast %cst_8 : f32 to vector<8x128xf32>
    %cst_9 = arith.constant 0.000000e+00 : f32
    %12 = vector.broadcast %cst_9 : f32 to vector<8x128xf32>
    %cst_10 = arith.constant 0.000000e+00 : f32
    %13 = vector.broadcast %cst_10 : f32 to vector<8x128xf32>
    %cst_11 = arith.constant 0.000000e+00 : f32
    %14 = vector.broadcast %cst_11 : f32 to vector<8x128xf32>
    %c0_i32_12 = arith.constant 0 : i32
    %c8_i32 = arith.constant 8 : i32
    %15 = arith.muli %c0_i32_12, %c8_i32 : i32
    %16 = tpu.assume_multiple %15, 8 : i32
    %c0 = arith.constant 0 : index
    %17 = arith.index_cast %16 : i32 to index
    %c0_13 = arith.constant 0 : index
    %18 = vector.load %arg2[%c0, %17, %c0_13] : memref<1x8x128xi32, #tpu.memory_space<vmem>>, vector<1x8x128xi32>
    %19 = vector.shape_cast %18 : vector<1x8x128xi32> to vector<8x128xi32>
    %c0_14 = arith.constant 0 : index
    %c0_15 = arith.constant 0 : index
    %20 = arith.index_cast %16 : i32 to index
    %c0_16 = arith.constant 0 : index
    %21 = vector.load %arg3[%c0_14, %c0_15, %20, %c0_16] : memref<1x4x8x128xf32, #tpu.memory_space<vmem>>, vector<1x1x8x128xf32>
    %22 = vector.shape_cast %21 : vector<1x1x8x128xf32> to vector<8x128xf32>
    %c0_17 = arith.constant 0 : index
    %c1 = arith.constant 1 : index
    %23 = arith.index_cast %16 : i32 to index
    %c0_18 = arith.constant 0 : index
    %24 = vector.load %arg3[%c0_17, %c1, %23, %c0_18] : memref<1x4x8x128xf32, #tpu.memory_space<vmem>>, vector<1x1x8x128xf32>
    %25 = vector.shape_cast %24 : vector<1x1x8x128xf32> to vector<8x128xf32>
    %c0_19 = arith.constant 0 : index
    %c2 = arith.constant 2 : index
    %26 = arith.index_cast %16 : i32 to index
    %c0_20 = arith.constant 0 : index
    %27 = vector.load %arg3[%c0_19, %c2, %26, %c0_20] : memref<1x4x8x128xf32, #tpu.memory_space<vmem>>, vector<1x1x8x128xf32>
    %28 = vector.shape_cast %27 : vector<1x1x8x128xf32> to vector<8x128xf32>
    %c0_21 = arith.constant 0 : index
    %c3 = arith.constant 3 : index
    %29 = arith.index_cast %16 : i32 to index
    %c0_22 = arith.constant 0 : index
    %30 = vector.load %arg3[%c0_21, %c3, %29, %c0_22] : memref<1x4x8x128xf32, #tpu.memory_space<vmem>>, vector<1x1x8x128xf32>
    %31 = vector.shape_cast %30 : vector<1x1x8x128xf32> to vector<8x128xf32>
    %c0_i32_23 = arith.constant 0 : i32
    %32 = vector.broadcast %c0_i32_23 : i32 to vector<8x128xi32>
    %33 = arith.cmpi eq, %19, %32 : vector<8x128xi32>
    %34 = arith.extui %33 : vector<8x128xi1> to vector<8x128xi32>
    %35 = arith.sitofp %34 : vector<8x128xi32> to vector<8x128xf32>
    %36 = arith.mulf %22, %35 : vector<8x128xf32>
    %37 = arith.addf %3, %36 : vector<8x128xf32>
    %38 = arith.mulf %22, %22 : vector<8x128xf32>
    %39 = arith.addf %7, %38 : vector<8x128xf32>
    %40 = arith.addf %11, %35 : vector<8x128xf32>
    %c1_i32 = arith.constant 1 : i32
    %41 = vector.broadcast %c1_i32 : i32 to vector<8x128xi32>
    %42 = arith.cmpi eq, %19, %41 : vector<8x128xi32>
    %43 = arith.extui %42 : vector<8x128xi1> to vector<8x128xi32>
    %44 = arith.sitofp %43 : vector<8x128xi32> to vector<8x128xf32>
    %45 = arith.mulf %25, %44 : vector<8x128xf32>
    %46 = arith.addf %4, %45 : vector<8x128xf32>
    %47 = arith.mulf %25, %25 : vector<8x128xf32>
    %48 = arith.addf %8, %47 : vector<8x128xf32>
    %49 = arith.addf %12, %44 : vector<8x128xf32>
    %c2_i32 = arith.constant 2 : i32
    %50 = vector.broadcast %c2_i32 : i32 to vector<8x128xi32>
    %51 = arith.cmpi eq, %19, %50 : vector<8x128xi32>
    %52 = arith.extui %51 : vector<8x128xi1> to vector<8x128xi32>
    %53 = arith.sitofp %52 : vector<8x128xi32> to vector<8x128xf32>
    %54 = arith.mulf %28, %53 : vector<8x128xf32>
    %55 = arith.addf %5, %54 : vector<8x128xf32>
    %56 = arith.mulf %28, %28 : vector<8x128xf32>
    %57 = arith.addf %9, %56 : vector<8x128xf32>
    %58 = arith.addf %13, %53 : vector<8x128xf32>
    %c3_i32 = arith.constant 3 : i32
    %59 = vector.broadcast %c3_i32 : i32 to vector<8x128xi32>
    %60 = arith.cmpi eq, %19, %59 : vector<8x128xi32>
    %61 = arith.extui %60 : vector<8x128xi1> to vector<8x128xi32>
    %62 = arith.sitofp %61 : vector<8x128xi32> to vector<8x128xf32>
    %63 = arith.mulf %31, %62 : vector<8x128xf32>
    %64 = arith.addf %6, %63 : vector<8x128xf32>
    %65 = arith.mulf %31, %31 : vector<8x128xf32>
    %66 = arith.addf %10, %65 : vector<8x128xf32>
    %67 = arith.addf %14, %62 : vector<8x128xf32>
    %c1_i32_24 = arith.constant 1 : i32
    %c0_25 = arith.constant 0 : index
    %c0_26 = arith.constant 0 : index
    %c0_27 = arith.constant 0 : index
    %c0_28 = arith.constant 0 : index
    %68 = vector.load %arg4[%c0_25, %c0_26, %c0_27, %c0_28] : memref<1x12x8x128xf32, #tpu.memory_space<vmem>>, vector<1x1x8x128xf32>
    %69 = vector.shape_cast %68 : vector<1x1x8x128xf32> to vector<8x128xf32>
    %70 = arith.addf %69, %37 : vector<8x128xf32>
    %c0_29 = arith.constant 0 : index
    %c0_30 = arith.constant 0 : index
    %c0_31 = arith.constant 0 : index
    %c0_32 = arith.constant 0 : index
    %71 = vector.load %arg4[%c0_29, %c0_30, %c0_31, %c0_32] : memref<1x12x8x128xf32, #tpu.memory_space<vmem>>, vector<1x1x8x128xf32>
    %72 = vector.shape_cast %71 : vector<1x1x8x128xf32> to vector<8x128xf32>
    %73 = vector.shape_cast %70 : vector<8x128xf32> to vector<1x1x8x128xf32>
    tpu.vector_store %arg4[%c0_29, %c0_30, %c0_31, %c0_32], %73 {strides = array<i32>} : memref<1x12x8x128xf32, #tpu.memory_space<vmem>>, vector<1x1x8x128xf32>,
    %c0_33 = arith.constant 0 : index
    %c1_34 = arith.constant 1 : index
    %c0_35 = arith.constant 0 : index
    %c0_36 = arith.constant 0 : index
    %74 = vector.load %arg4[%c0_33, %c1_34, %c0_35, %c0_36] : memref<1x12x8x128xf32, #tpu.memory_space<vmem>>, vector<1x1x8x128xf32>
    %75 = vector.shape_cast %74 : vector<1x1x8x128xf32> to vector<8x128xf32>
    %76 = arith.addf %75, %46 : vector<8x128xf32>
    %c0_37 = arith.constant 0 : index
    %c1_38 = arith.constant 1 : index
    %c0_39 = arith.constant 0 : index
    %c0_40 = arith.constant 0 : index
    %77 = vector.load %arg4[%c0_37, %c1_38, %c0_39, %c0_40] : memref<1x12x8x128xf32, #tpu.memory_space<vmem>>, vector<1x1x8x128xf32>
    %78 = vector.shape_cast %77 : vector<1x1x8x128xf32> to vector<8x128xf32>
    %79 = vector.shape_cast %76 : vector<8x128xf32> to vector<1x1x8x128xf32>
    tpu.vector_store %arg4[%c0_37, %c1_38, %c0_39, %c0_40], %79 {strides = array<i32>} : memref<1x12x8x128xf32, #tpu.memory_space<vmem>>, vector<1x1x8x128xf32>,
    %c0_41 = arith.constant 0 : index
    %c2_42 = arith.constant 2 : index
    %c0_43 = arith.constant 0 : index
    %c0_44 = arith.constant 0 : index
    %80 = vector.load %arg4[%c0_41, %c2_42, %c0_43, %c0_44] : memref<1x12x8x128xf32, #tpu.memory_space<vmem>>, vector<1x1x8x128xf32>
    %81 = vector.shape_cast %80 : vector<1x1x8x128xf32> to vector<8x128xf32>
    %82 = arith.addf %81, %55 : vector<8x128xf32>
    %c0_45 = arith.constant 0 : index
    %c2_46 = arith.constant 2 : index
    %c0_47 = arith.constant 0 : index
    %c0_48 = arith.constant 0 : index
    %83 = vector.load %arg4[%c0_45, %c2_46, %c0_47, %c0_48] : memref<1x12x8x128xf32, #tpu.memory_space<vmem>>, vector<1x1x8x128xf32>
    %84 = vector.shape_cast %83 : vector<1x1x8x128xf32> to vector<8x128xf32>
    %85 = vector.shape_cast %82 : vector<8x128xf32> to vector<1x1x8x128xf32>
    tpu.vector_store %arg4[%c0_45, %c2_46, %c0_47, %c0_48], %85 {strides = array<i32>} : memref<1x12x8x128xf32, #tpu.memory_space<vmem>>, vector<1x1x8x128xf32>,
    %c0_49 = arith.constant 0 : index
    %c3_50 = arith.constant 3 : index
    %c0_51 = arith.constant 0 : index
    %c0_52 = arith.constant 0 : index
    %86 = vector.load %arg4[%c0_49, %c3_50, %c0_51, %c0_52] : memref<1x12x8x128xf32, #tpu.memory_space<vmem>>, vector<1x1x8x128xf32>
    %87 = vector.shape_cast %86 : vector<1x1x8x128xf32> to vector<8x128xf32>
    %88 = arith.addf %87, %64 : vector<8x128xf32>
    %c0_53 = arith.constant 0 : index
    %c3_54 = arith.constant 3 : index
    %c0_55 = arith.constant 0 : index
    %c0_56 = arith.constant 0 : index
    %89 = vector.load %arg4[%c0_53, %c3_54, %c0_55, %c0_56] : memref<1x12x8x128xf32, #tpu.memory_space<vmem>>, vector<1x1x8x128xf32>
    %90 = vector.shape_cast %89 : vector<1x1x8x128xf32> to vector<8x128xf32>
    %91 = vector.shape_cast %88 : vector<8x128xf32> to vector<1x1x8x128xf32>
    tpu.vector_store %arg4[%c0_53, %c3_54, %c0_55, %c0_56], %91 {strides = array<i32>} : memref<1x12x8x128xf32, #tpu.memory_space<vmem>>, vector<1x1x8x128xf32>,
    %c0_57 = arith.constant 0 : index
    %c4 = arith.constant 4 : index
    %c0_58 = arith.constant 0 : index
    %c0_59 = arith.constant 0 : index
    %92 = vector.load %arg4[%c0_57, %c4, %c0_58, %c0_59] : memref<1x12x8x128xf32, #tpu.memory_space<vmem>>, vector<1x1x8x128xf32>
    %93 = vector.shape_cast %92 : vector<1x1x8x128xf32> to vector<8x128xf32>
    %94 = arith.addf %93, %39 : vector<8x128xf32>
    %c0_60 = arith.constant 0 : index
    %c4_61 = arith.constant 4 : index
    %c0_62 = arith.constant 0 : index
    %c0_63 = arith.constant 0 : index
    %95 = vector.load %arg4[%c0_60, %c4_61, %c0_62, %c0_63] : memref<1x12x8x128xf32, #tpu.memory_space<vmem>>, vector<1x1x8x128xf32>
    %96 = vector.shape_cast %95 : vector<1x1x8x128xf32> to vector<8x128xf32>
    %97 = vector.shape_cast %94 : vector<8x128xf32> to vector<1x1x8x128xf32>
    tpu.vector_store %arg4[%c0_60, %c4_61, %c0_62, %c0_63], %97 {strides = array<i32>} : memref<1x12x8x128xf32, #tpu.memory_space<vmem>>, vector<1x1x8x128xf32>,
    %c0_64 = arith.constant 0 : index
    %c5 = arith.constant 5 : index
    %c0_65 = arith.constant 0 : index
    %c0_66 = arith.constant 0 : index
    %98 = vector.load %arg4[%c0_64, %c5, %c0_65, %c0_66] : memref<1x12x8x128xf32, #tpu.memory_space<vmem>>, vector<1x1x8x128xf32>
    %99 = vector.shape_cast %98 : vector<1x1x8x128xf32> to vector<8x128xf32>
    %100 = arith.addf %99, %48 : vector<8x128xf32>
    %c0_67 = arith.constant 0 : index
    %c5_68 = arith.constant 5 : index
    %c0_69 = arith.constant 0 : index
    %c0_70 = arith.constant 0 : index
    %101 = vector.load %arg4[%c0_67, %c5_68, %c0_69, %c0_70] : memref<1x12x8x128xf32, #tpu.memory_space<vmem>>, vector<1x1x8x128xf32>
    %102 = vector.shape_cast %101 : vector<1x1x8x128xf32> to vector<8x128xf32>
    %103 = vector.shape_cast %100 : vector<8x128xf32> to vector<1x1x8x128xf32>
    tpu.vector_store %arg4[%c0_67, %c5_68, %c0_69, %c0_70], %103 {strides = array<i32>} : memref<1x12x8x128xf32, #tpu.memory_space<vmem>>, vector<1x1x8x128xf32>,
    %c0_71 = arith.constant 0 : index
    %c6 = arith.constant 6 : index
    %c0_72 = arith.constant 0 : index
    %c0_73 = arith.constant 0 : index
    %104 = vector.load %arg4[%c0_71, %c6, %c0_72, %c0_73] : memref<1x12x8x128xf32, #tpu.memory_space<vmem>>, vector<1x1x8x128xf32>
    %105 = vector.shape_cast %104 : vector<1x1x8x128xf32> to vector<8x128xf32>
    %106 = arith.addf %105, %57 : vector<8x128xf32>
    %c0_74 = arith.constant 0 : index
    %c6_75 = arith.constant 6 : index
    %c0_76 = arith.constant 0 : index
    %c0_77 = arith.constant 0 : index
    %107 = vector.load %arg4[%c0_74, %c6_75, %c0_76, %c0_77] : memref<1x12x8x128xf32, #tpu.memory_space<vmem>>, vector<1x1x8x128xf32>
    %108 = vector.shape_cast %107 : vector<1x1x8x128xf32> to vector<8x128xf32>
    %109 = vector.shape_cast %106 : vector<8x128xf32> to vector<1x1x8x128xf32>
    tpu.vector_store %arg4[%c0_74, %c6_75, %c0_76, %c0_77], %109 {strides = array<i32>} : memref<1x12x8x128xf32, #tpu.memory_space<vmem>>, vector<1x1x8x128xf32>,
    %c0_78 = arith.constant 0 : index
    %c7 = arith.constant 7 : index
    %c0_79 = arith.constant 0 : index
    %c0_80 = arith.constant 0 : index
    %110 = vector.load %arg4[%c0_78, %c7, %c0_79, %c0_80] : memref<1x12x8x128xf32, #tpu.memory_space<vmem>>, vector<1x1x8x128xf32>
    %111 = vector.shape_cast %110 : vector<1x1x8x128xf32> to vector<8x128xf32>
    %112 = arith.addf %111, %66 : vector<8x128xf32>
    %c0_81 = arith.constant 0 : index
    %c7_82 = arith.constant 7 : index
    %c0_83 = arith.constant 0 : index
    %c0_84 = arith.constant 0 : index
    %113 = vector.load %arg4[%c0_81, %c7_82, %c0_83, %c0_84] : memref<1x12x8x128xf32, #tpu.memory_space<vmem>>, vector<1x1x8x128xf32>
    %114 = vector.shape_cast %113 : vector<1x1x8x128xf32> to vector<8x128xf32>
    %115 = vector.shape_cast %112 : vector<8x128xf32> to vector<1x1x8x128xf32>
    tpu.vector_store %arg4[%c0_81, %c7_82, %c0_83, %c0_84], %115 {strides = array<i32>} : memref<1x12x8x128xf32, #tpu.memory_space<vmem>>, vector<1x1x8x128xf32>,
    %c0_85 = arith.constant 0 : index
    %c8 = arith.constant 8 : index
    %c0_86 = arith.constant 0 : index
    %c0_87 = arith.constant 0 : index
    %116 = vector.load %arg4[%c0_85, %c8, %c0_86, %c0_87] : memref<1x12x8x128xf32, #tpu.memory_space<vmem>>, vector<1x1x8x128xf32>
    %117 = vector.shape_cast %116 : vector<1x1x8x128xf32> to vector<8x128xf32>
    %118 = arith.addf %117, %40 : vector<8x128xf32>
    %c0_88 = arith.constant 0 : index
    %c8_89 = arith.constant 8 : index
    %c0_90 = arith.constant 0 : index
    %c0_91 = arith.constant 0 : index
    %119 = vector.load %arg4[%c0_88, %c8_89, %c0_90, %c0_91] : memref<1x12x8x128xf32, #tpu.memory_space<vmem>>, vector<1x1x8x128xf32>
    %120 = vector.shape_cast %119 : vector<1x1x8x128xf32> to vector<8x128xf32>
    %121 = vector.shape_cast %118 : vector<8x128xf32> to vector<1x1x8x128xf32>
    tpu.vector_store %arg4[%c0_88, %c8_89, %c0_90, %c0_91], %121 {strides = array<i32>} : memref<1x12x8x128xf32, #tpu.memory_space<vmem>>, vector<1x1x8x128xf32>,
    %c0_92 = arith.constant 0 : index
    %c9 = arith.constant 9 : index
    %c0_93 = arith.constant 0 : index
    %c0_94 = arith.constant 0 : index
    %122 = vector.load %arg4[%c0_92, %c9, %c0_93, %c0_94] : memref<1x12x8x128xf32, #tpu.memory_space<vmem>>, vector<1x1x8x128xf32>
    %123 = vector.shape_cast %122 : vector<1x1x8x128xf32> to vector<8x128xf32>
    %124 = arith.addf %123, %49 : vector<8x128xf32>
    %c0_95 = arith.constant 0 : index
    %c9_96 = arith.constant 9 : index
    %c0_97 = arith.constant 0 : index
    %c0_98 = arith.constant 0 : index
    %125 = vector.load %arg4[%c0_95, %c9_96, %c0_97, %c0_98] : memref<1x12x8x128xf32, #tpu.memory_space<vmem>>, vector<1x1x8x128xf32>
    %126 = vector.shape_cast %125 : vector<1x1x8x128xf32> to vector<8x128xf32>
    %127 = vector.shape_cast %124 : vector<8x128xf32> to vector<1x1x8x128xf32>
    tpu.vector_store %arg4[%c0_95, %c9_96, %c0_97, %c0_98], %127 {strides = array<i32>} : memref<1x12x8x128xf32, #tpu.memory_space<vmem>>, vector<1x1x8x128xf32>,
    %c0_99 = arith.constant 0 : index
    %c10 = arith.constant 10 : index
    %c0_100 = arith.constant 0 : index
    %c0_101 = arith.constant 0 : index
    %128 = vector.load %arg4[%c0_99, %c10, %c0_100, %c0_101] : memref<1x12x8x128xf32, #tpu.memory_space<vmem>>, vector<1x1x8x128xf32>
    %129 = vector.shape_cast %128 : vector<1x1x8x128xf32> to vector<8x128xf32>
    %130 = arith.addf %129, %58 : vector<8x128xf32>
    %c0_102 = arith.constant 0 : index
    %c10_103 = arith.constant 10 : index
    %c0_104 = arith.constant 0 : index
    %c0_105 = arith.constant 0 : index
    %131 = vector.load %arg4[%c0_102, %c10_103, %c0_104, %c0_105] : memref<1x12x8x128xf32, #tpu.memory_space<vmem>>, vector<1x1x8x128xf32>
    %132 = vector.shape_cast %131 : vector<1x1x8x128xf32> to vector<8x128xf32>
    %133 = vector.shape_cast %130 : vector<8x128xf32> to vector<1x1x8x128xf32>
    tpu.vector_store %arg4[%c0_102, %c10_103, %c0_104, %c0_105], %133 {strides = array<i32>} : memref<1x12x8x128xf32, #tpu.memory_space<vmem>>, vector<1x1x8x128xf32>,
    %c0_106 = arith.constant 0 : index
    %c11 = arith.constant 11 : index
    %c0_107 = arith.constant 0 : index
    %c0_108 = arith.constant 0 : index
    %134 = vector.load %arg4[%c0_106, %c11, %c0_107, %c0_108] : memref<1x12x8x128xf32, #tpu.memory_space<vmem>>, vector<1x1x8x128xf32>
    %135 = vector.shape_cast %134 : vector<1x1x8x128xf32> to vector<8x128xf32>
    %136 = arith.addf %135, %67 : vector<8x128xf32>
    %c0_109 = arith.constant 0 : index
    %c11_110 = arith.constant 11 : index
    %c0_111 = arith.constant 0 : index
    %c0_112 = arith.constant 0 : index
    %137 = vector.load %arg4[%c0_109, %c11_110, %c0_111, %c0_112] : memref<1x12x8x128xf32, #tpu.memory_space<vmem>>, vector<1x1x8x128xf32>
    %138 = vector.shape_cast %137 : vector<1x1x8x128xf32> to vector<8x128xf32>
    %139 = vector.shape_cast %136 : vector<8x128xf32> to vector<1x1x8x128xf32>
    tpu.vector_store %arg4[%c0_109, %c11_110, %c0_111, %c0_112], %139 {strides = array<i32>} : memref<1x12x8x128xf32, #tpu.memory_space<vmem>>, vector<1x1x8x128xf32>,
    return
  }
  func.func @transform_0(%arg0: i32, %arg1: i32) -> (i32, i32, i32) {
    %c0_i32 = arith.constant 0 : i32
    %c0_i32_0 = arith.constant 0 : i32
    return %arg0, %arg1, %c0_i32 : i32, i32, i32
  }
  func.func @transform_1(%arg0: i32, %arg1: i32) -> (i32, i32, i32, i32) {
    %c0_i32 = arith.constant 0 : i32
    %c0_i32_0 = arith.constant 0 : i32
    %c0_i32_1 = arith.constant 0 : i32
    return %arg0, %c0_i32, %arg1, %c0_i32_0 : i32, i32, i32, i32
  }
  func.func @transform_2(%arg0: i32, %arg1: i32) -> (i32, i32, i32, i32) {
    %c0_i32 = arith.constant 0 : i32
    %c0_i32_0 = arith.constant 0 : i32
    %c0_i32_1 = arith.constant 0 : i32
    %c0_i32_2 = arith.constant 0 : i32
    return %arg0, %c0_i32, %c0_i32_0, %c0_i32_1 : i32, i32, i32, i32
  }
}

</mosaic_0001>

<bundles_post_ra>
// kernel: tpu_custom_call.1
= control target key start
LH: loop header
LB: loop body
LE: loop exit
PB: predicated region body
PF: predicated region fallthrough
CT: control target
= control target key end

     0   :  { %7 = vsyncpa [#allocation3], 0  ;;  %s963_s0 = inlined_call_operand.hbm [shape: s32[2,8,128], index: 0, kind: input, shape index: {}]   ;;  %s964_s1 = inlined_call_operand.hbm [shape: f32[2,4,8,128], index: 1, kind: input, shape index: {}]   ;;  %s965_s2 = inlined_call_operand.hbm [shape: f32[2,12,8,128], index: 2, kind: output, shape index: {}]  }
   0x1   :  { %9 = vsyncpa [#allocation3 + $0x1], 0 }
   0x2   :  { %10 = vsyncpa [#allocation6], 0 }
   0x3   :  { %12 = vsyncpa [#allocation6 + $0x1], 0 }
   0x4   :  { %13 = vsyncpa [#allocation4], 0 }
   0x5   :  { %15 = vsyncpa [#allocation4 + $0x1], 0  ;;  %s737_s9 = smov 0   ;;  %s739_s10 = smov 0  }
   0x6   :  { %s741_s11 = smov 0   ;;  %s743_s12 = smov 0  }
   0x7   :  { %s745_s13 = smov 0   ;;  %s747_s14 = smov 0  }
   0x8 LB: > { %s447_s15 = sadd.s32 4294967295, %s712_s14   ;;  %s448_s16 = sadd.s32 4294967294, %s712_s14   ;;  %s712_s14 = sphi %s747_s14, %s21_s14   ;;  %s708_s13 = sphi %s745_s13, %s984_s13   ;;  %s704_s12 = sphi %s743_s12, %s983_s12   ;;  %s700_s11 = sphi %s741_s11, %s982_s11   ;;  %s696_s10 = sphi %s739_s10, %s981_s10   ;;  %s692_s9 = sphi %s737_s9, %s980_s9  }
   0x9   : > { %s33_s17 = sadd.s32 1, %s708_s13  ;;  %s42_s18 = sadd.s32 1, %s700_s11 }
   0xa   : > { %p35_p0 = scmp.ge.s32.totalorder %s33_s17, 2  ;;  %p49_p1 = scmp.ne.s32.totalorder %s700_s11, %s696_s10 }
   0xb   : > { %p50_p2 = scmp.eq.s32.totalorder %s712_s14, 0  ;;  %p55_p3 = scmp.ne.s32.totalorder %s696_s10, %s692_s9 }
   0xc   : > { %s986_s17 = smov (%p35_p0, %s33_s17), 0  ;;  %p56_p5 = scmp.eq.s32.totalorder %s447_s15, 0 }
   0xd   : > { %p778_p4 = por %p50_p2, %p49_p1  ;;  %s37_s20 = ssub.s32 %s708_s13, %s986_s17 }
   0xe   : > { %p107_p6 = scmp.eq.s32.totalorder %s447_s15, 1  ;;  %p40_p7 = scmp.eq.s32.totalorder %s37_s20, 0 }
   0xf   : > { %p784_p8 = por %p56_p5, %p55_p3  ;;  %p113_p10 = scmp.eq.s32.totalorder %s448_s16, 1 }
  0x10   : > { %p788_p9 = por %p107_p6, %p49_p1  ;;  %p511_p13 = scmp.lt.s32.totalorder %s712_s14, 2 }
  0x11   : > { %s969_s21 = scalar_select %p784_p8, 1, 0 }
  0x12   : > { %s970_s22 = scalar_select %p788_p9, 1, 0 }
  0x13   : > { %s793_s23 = scalar_select %p40_p7, %s700_s11, %s42_s18  }
  0x14   : > { %p795_p11 = por %p113_p10, %p55_p3  ;;  %s802_s25 = sand.u32 1, %s700_s11  }
  0x15   : > { %s451_s26 = sshll.u32 %s802_s25, 3  ;;  %s452_s27 = sshll.u32 %s708_s13, 7 }
  0x16   : > { %s971_s24 = scalar_select %p795_p11, 1, 0 }
  0x17   : > { %s809_s30 = scalar_lea.hbm %s963_s0, %s452_s27  ;;  %s137_s3 = scalar_lea.vmem [#allocation2], %s451_s26 }
  0x18   : > { %s145_s4 = sshll.u32 %s137_s3, 4  ;;  %p815_p0 = pnand %p511_p13, %p778_p4  ;;  %s811_s4 = int_to_ptr.vmem [resolvable:$true] %s145_s4 }
  0x19   : > { %s134_s6 = scalar_lea.sflag [#allocation3], %s802_s25  ;;  %s566_s7 = scalar_lea.hbm %s809_s30, 128 }
  0x1a   : > { %p567_p3 = scmp.ne.s32.totalorder %s809_s30, %s566_s7  ;;  %p568_p5 = pneg %p815_p0 }
  0x1b   : > { %s571_s16 = scalar_lea.hbm %s963_s0, 256  ;;  %p572_p4 = scmp.lt.u32.totalorder %s809_s30, %s963_s0 }
  0x1c   : > { %p569_p6 = pnand %p568_p5, %p567_p3  ;;  %p573_p10 = scmp.lt.u32.totalorder %s571_s16, %s566_s7 }
  0x1d   : > { %p575_p12 = scmp.lt.u32.totalorder %s566_s7, %s809_s30 }
  0x1e   : > { %p570_p7 = pneg %p569_p6  ;;  %p574_p13 = por %p573_p10, %p572_p4 }
  0x20   : > { %p576_p1 = por %p575_p12, %p574_p13 }
  0x22   : > { %p577_p2 = pnand %p576_p1, %p570_p7 }
  0x24   : > { %580 = shalt.err (!%p577_p2)
}
  0x25   : > { %s581_s20 = scalar_lea.vmem %s811_s4, 128  ;;  %s714_s26 = smov [#allocation2]  }
  0x26   : > { %p582_p3 = scmp.ne.s32.totalorder %s811_s4, %s581_s20  ;;  %s586_s27 = sshll.u32 %s714_s26, 4  ;;  %s587_s27 = int_to_ptr.vmem [resolvable:$false] %s586_s27 }
  0x27   : > { %s588_s28 = scalar_lea.vmem %s587_s27, 256  ;;  %p589_p9 = scmp.lt.s32.totalorder %s811_s4, %s587_s27 }
  0x28   : > { %p584_p6 = pnand %p582_p3, %p568_p5  ;;  %p590_p4 = scmp.lt.s32.totalorder %s588_s28, %s581_s20 }
  0x2a   : > { %p585_p11 = pneg %p584_p6  ;;  %p591_p10 = por %p590_p4, %p589_p9 }
  0x2c   : > { %p592_p12 = pnand %p591_p10, %p585_p11 }
  0x2e   : > { %595 = shalt.err (!%p592_p12)
}
  0x2f   : > { %503 = dma.hbm_to_vmem [thread:$0]  (!%p815_p0), %s809_s30, 128, %s811_s4, %s134_s6  }
  0x30   : > { %p973_p1 = scmp.lt.s32.totalorder %s712_s14, 3  ;;  %p974_p2 = scmp.ge.s32.totalorder %s712_s14, 1 }
  0x31   : > { %s453_s3 = sshll.u32 %s802_s25, 5  ;;  %s491_s7 = sshll.u32 %s708_s13, 9 }
  0x32   : > { %p851_p7 = pnand %p974_p2, %p973_p1  ;;  %s860_s16 = scalar_lea.hbm %s964_s1, %s491_s7 }
  0x33   : > { %s156_s18 = scalar_lea.vmem [#allocation5], %s453_s3  ;;  %s153_s30 = scalar_lea.sflag [#allocation6], %s802_s25 }
  0x34   : > { %s164_s19 = sshll.u32 %s156_s18, 4  ;;  %s596_s4 = scalar_lea.hbm %s860_s16, 512  ;;  %s862_s19 = int_to_ptr.vmem [resolvable:$true] %s164_s19 }
  0x35   : > { %p597_p9 = scmp.ne.s32.totalorder %s860_s16, %s596_s4  ;;  %s601_s26 = scalar_lea.hbm %s964_s1, 1024 }
  0x36   : > { %p602_p3 = scmp.lt.u32.totalorder %s860_s16, %s964_s1  ;;  %p603_p6 = scmp.lt.u32.totalorder %s601_s26, %s596_s4 }
  0x37   : > { %p599_p11 = pnand %p597_p9, %p568_p5  ;;  %p605_p10 = scmp.lt.u32.totalorder %s596_s4, %s860_s16 }
  0x38   : > { %p604_p4 = por %p603_p6, %p602_p3 }
  0x39   : > { %p600_p13 = pneg %p599_p11 }
  0x3a   : > { %p606_p12 = por %p605_p10, %p604_p4 }
  0x3c   : > { %p607_p1 = pnand %p606_p12, %p600_p13 }
  0x3e   : > { %610 = shalt.err (!%p607_p1)
}
  0x3f   : > { %s611_s3 = scalar_lea.vmem %s862_s19, 512  ;;  %s715_s7 = smov [#allocation5]  }
  0x40   : > { %p612_p2 = scmp.ne.s32.totalorder %s862_s19, %s611_s3  ;;  %s616_s8 = sshll.u32 %s715_s7, 4  ;;  %s617_s8 = int_to_ptr.vmem [resolvable:$false] %s616_s8 }
  0x41   : > { %s618_s15 = scalar_lea.vmem %s617_s8, 1024  ;;  %p619_p8 = scmp.lt.s32.totalorder %s862_s19, %s617_s8 }
  0x42   : > { %p614_p9 = pnand %p612_p2, %p568_p5  ;;  %p620_p3 = scmp.lt.s32.totalorder %s618_s15, %s611_s3 }
  0x44   : > { %p615_p11 = pneg %p614_p9  ;;  %p621_p6 = por %p620_p3, %p619_p8 }
  0x46   : > { %p622_p4 = pnand %p621_p6, %p615_p11 }
  0x48   : > { %625 = shalt.err (!%p622_p4)
}
  0x49   : > { %s716_s18 = smov 128   ;;  %s717_s4 = smov 8  }
  0x4a   : > { %506 = dma.hbm_to_vmem [thread:$0]  (!%p815_p0), %s860_s16, 512, %s862_s19, %s153_s30, %s716_s18, %s716_s18, %s717_s4  }
  0x4b   : > { %176 = sbr.rel (%p851_p7) target bundleno = 114 (0x72), region = 28  ;;  %s893_s6 = sand.u32 (!%p851_p7), 1, %s696_s10  }
  0x4c   : > { %s457_s20 = sshll.u32 (!%p851_p7), %s893_s6, 3  ;;  %s179_s26 = scalar_lea.sflag (!%p851_p7), [#allocation3], %s893_s6 }
  0x4d   : > { %s182_s27 = scalar_lea.vmem (!%p851_p7), [#allocation2], %s457_s20  ;;  %p976_p8 = scmp.ne.s32.totalorder (!%p851_p7), %s969_s21, 0 }
  0x52   : > { %679 = dma.done.wait (%p976_p8), %s179_s26, 128  }
  0x53   : > { %681 = vsyncadd (%p976_p8), %s179_s26, 4294967168  ;;  %s458_s25 = sshll.u32 %s893_s6, 5  ;;  %s188_s5 = scalar_lea.sflag [#allocation6], %s893_s6 }
  0x54   : > { %s191_s29 = scalar_lea.vmem [#allocation5], %s458_s25 }
  0x55   : > { %683 = dma.done.wait (%p976_p8), %s188_s5, 512  }
  0x56   : > { %685 = vsyncadd (%p976_p8), %s188_s5, 4294966784  ;;  %s492_s16 = smul.u32 96, %s893_s6  ;;  %v233_v0 = vld [vmem:[%s182_s27] sm:$0xff]  ;;  %v234_v1 = vld [vmem:[%s191_s29] sm:$0xff]  ;;  %v718_v5 = vmov 0.0   ;;  %p977_p5 = scmp.ne.s32.totalorder %s970_s22, 0 }
  0x57   : > { %v459_v2 = vld [vmem:[%s191_s29 + $0x8] sm:$0xff]  ;;  %vm244_vm0 = vcmp.eq.s32.totalorder %v233_v0, 0  ;;  %vm252_vm1 = vcmp.eq.s32.totalorder %v233_v0, 1  ;;  %v460_v3 = vld [vmem:[%s191_s29 + $0x10] sm:$0xff]  ;;  %vm260_vm2 = vcmp.eq.s32.totalorder %v233_v0, 2  ;;  %v461_v4 = vld [vmem:[%s191_s29 + $0x18] sm:$0xff]  ;;  %v249_v14 = vmul.f32 %v234_v1, %v234_v1 }
  0x58   : > { %vm268_vm3 = vcmp.eq.s32.totalorder %v233_v0, 3  ;;  %v462_v6 = vsel %vm244_vm0, 1.0, %v718_v5  ;;  %v463_v7 = vsel %vm252_vm1, 1.0, %v718_v5  ;;  %v464_v8 = vsel %vm260_vm2, 1.0, %v718_v5  ;;  %s493_s21 = smul.u32 1536, %s704_s12  ;;  %s216_s19 = scalar_lea.vmem [#allocation7], %s492_s16 }
  0x59   : > { %v465_v9 = vsel %vm268_vm3, 1.0, %v718_v5  ;;  %v247_v10 = vmul.f32 %v462_v6, %v234_v1  ;;  %v255_v11 = vmul.f32 %v463_v7, %v459_v2  ;;  %v263_v12 = vmul.f32 %v464_v8, %v460_v3  ;;  %s337_s30 = sshll.u32 %s216_s19, 4  ;;  %473 = vst [vmem:[%s216_s19 + $0x20] sm:$0xff] %v249_v14  ;;  %481 = vst [vmem:[%s216_s19 + $0x40] sm:$0xff] %v462_v6  ;;  %s324_s12 = scalar_lea.sflag [#allocation4], %s893_s6  ;;  %s914_s30 = int_to_ptr.vmem [resolvable:$true] %s337_s30 }
  0x5a   : > { %v271_v13 = vmul.f32 %v465_v9, %v461_v4  ;;  %v257_v15 = vmul.f32 %v459_v2, %v459_v2  ;;  %v265_v16 = vmul.f32 %v460_v3, %v460_v3  ;;  %v273_v17 = vmul.f32 %v461_v4, %v461_v4  ;;  %s912_s7 = scalar_lea.hbm %s965_s2, %s493_s21  ;;  %483 = vst [vmem:[%s216_s19 + $0x48] sm:$0xff] %v463_v7  ;;  %s626_s8 = scalar_lea.vmem %s914_s30, 1536 }
  0x5b   : > { %278 = vst [vmem:[%s216_s19] sm:$0xff] %v247_v10  ;;  %467 = vst [vmem:[%s216_s19 + $0x8] sm:$0xff] %v255_v11  ;;  %p627_p0 = scmp.ne.s32.totalorder %s914_s30, %s626_s8  ;;  %s719_s15 = smov [#allocation7]  }
  0x5c   : > { %469 = vst [vmem:[%s216_s19 + $0x10] sm:$0xff] %v263_v12  ;;  %471 = vst [vmem:[%s216_s19 + $0x18] sm:$0xff] %v271_v13  ;;  %s630_s18 = sshll.u32 %s719_s15, 4  ;;  %s631_s18 = int_to_ptr.vmem [resolvable:$false] %s630_s18 }
  0x5d   : > { %475 = vst [vmem:[%s216_s19 + $0x28] sm:$0xff] %v257_v15  ;;  %477 = vst [vmem:[%s216_s19 + $0x30] sm:$0xff] %v265_v16  ;;  %p628_p7 = pnand %p627_p0, %p977_p5  ;;  %s632_s4 = scalar_lea.vmem %s631_s18, 3072 }
  0x5e   : > { %479 = vst [vmem:[%s216_s19 + $0x38] sm:$0xff] %v273_v17  ;;  %485 = vst [vmem:[%s216_s19 + $0x50] sm:$0xff] %v464_v8  ;;  %p633_p10 = scmp.lt.s32.totalorder %s914_s30, %s631_s18  ;;  %p634_p12 = scmp.lt.s32.totalorder %s632_s4, %s626_s8 }
  0x5f   : > { %487 = vst [vmem:[%s216_s19 + $0x58] sm:$0xff] %v465_v9  ;;  %p629_p13 = pneg %p628_p7 }
  0x60   : > { %p635_p1 = por %p634_p12, %p633_p10 }
  0x62   : > { %p636_p2 = pnand %p635_p1, %p629_p13 }
  0x64   : > { %639 = shalt.err (!%p636_p2)
}
  0x65   : > { %s640_s20 = scalar_lea.hbm %s912_s7, 1536  ;;  %s644_s25 = scalar_lea.hbm %s965_s2, 3072 }
  0x66   : > { %p641_p9 = scmp.ne.s32.totalorder %s912_s7, %s640_s20  ;;  %p645_p6 = scmp.lt.u32.totalorder %s912_s7, %s965_s2 }
  0x67   : > { %p646_p4 = scmp.lt.u32.totalorder %s644_s25, %s640_s20  ;;  %p648_p0 = scmp.lt.u32.totalorder %s640_s20, %s912_s7 }
  0x68   : > { %p642_p11 = pnand %p641_p9, %p977_p5 }
  0x69   : > { %p647_p8 = por %p646_p4, %p645_p6 }
  0x6a   : > { %p643_p3 = pneg %p642_p11 }
  0x6b   : > { %p649_p7 = por %p648_p0, %p647_p8 }
  0x6d   : > { %p650_p13 = pnand %p649_p7, %p643_p3 }
  0x6f   : > { %653 = shalt.err (!%p650_p13)
}
  0x70   : > { %s720_s16 = smov 128   ;;  %s721_s21 = smov 8  }
  0x71   : > { %498 = dma.vmem_to_hbm [thread:$0]  (%p977_p5), %s914_s30, 1536, %s912_s7, %s324_s12, %s720_s16, %s720_s16, %s721_s21  }
  0x72 PF: > { %s352_s19 = sand.u32 1, %s692_s9   ;;  %p978_p10 = scmp.ne.s32.totalorder %s971_s24, 0 }
  0x73   : > { %p979_p12 = scmp.ge.s32.totalorder %s712_s14, 2  ;;  %s353_s28 = scalar_lea.sflag [#allocation4], %s352_s19 }
  0x75   : > { %p508_p1 = pnand %p979_p12, %p978_p10 }
  0x77   : > { %687 = dma.done.wait (!%p508_p1), %s353_s28, 1536  }
  0x78   : > { %689 = vsyncadd (!%p508_p1), %s353_s28, 4294965760  ;;  %s21_s14 = sadd.s32 1, %s712_s14   ;;  %s980_s9 = smov %s696_s10 }
  0x79   : > { %p18_p2 = scmp.ge.s32.totalorder %s21_s14, 4   ;;  %s981_s10 = smov %s700_s11 }
  0x7a   : > { %s982_s11 = smov %s793_s23  ;;  %s983_s12 = smov %s708_s13 }
  0x7b   : > { %s984_s13 = smov %s986_s17  ;;  %20 = sbr.rel (!%p18_p2) target bundleno = 8 (0x8), region = 104 }
  0x82   :  { %358 = vsyncpa [#allocation3], 1 }
  0x83   :  { %360 = vsyncpa [#allocation3 + $0x1], 1 }
  0x84   :  { %361 = vsyncpa [#allocation6], 1 }
  0x85   :  { %363 = vsyncpa [#allocation6 + $0x1], 1 }
  0x86   :  { %364 = vsyncpa [#allocation4], 1 }
  0x87   :  { %366 = vsyncpa [#allocation4 + $0x1], 1 }

</bundles_post_ra>
